<compile_context>
chip_gen: v5e
topology: v5e:2x2
jax: 0.10.0
libtpu: 0.0.40
codegen_flags: <defaults>
</compile_context>

<pallas_src>
import math

import jax
import jax.numpy as jnp
from jax.experimental import pallas as pl
from jax.experimental.pallas import tpu as pltpu

_MAX_ROW_TILE = 2048


def _scale_norm_kernel(eps):
    def kernel(scale_ref, x_ref, o_ref):
        # scale_ref: (1,) f32 in SMEM; x_ref/o_ref: (row_tile, H) in VMEM.
        xf = x_ref[...].astype(jnp.float32)
        ms = jnp.mean(xf * xf, axis=-1, keepdims=True)          # mean of squares
        norm = jnp.sqrt(ms)                                     # RMS, [tile, 1]
        # Per-row factor: only `row_tile` reciprocals instead of H divides/row.
        # approx=False keeps bit-level agreement with the divide reference.
        inv = pl.reciprocal(norm + eps, approx=False) * scale_ref[0]
        o_ref[...] = (xf * inv).astype(o_ref.dtype)
    return kernel


def _vmem_limit_bytes():
    """Generation-aware scoped-VMEM limit with a conservative fallback."""
    try:
        cap = int(pltpu.get_tpu_info().vmem_capacity_bytes)
    except Exception:
        cap = 64 << 20  # assume the smallest per-TensorCore VMEM (v7x)
    # Leave headroom for compiler-internal scratch; cap the request.
    return int(max(32 << 20, min(cap - (16 << 20), 100 << 20)))


def _pick_row_tile(rows, hidden, itemsize, vmem_limit):
    """Pick the largest legal row tile that fits the VMEM budget."""
    # Sublane alignment: 8 for 32-bit, 16 for bf16, 32 for 8-bit (packed sublanes).
    align = 8 * max(1, 4 // max(1, itemsize))
    # Per-row VMEM cost: double-buffered input + output tiles plus ~3 f32-wide
    # in-kernel temporaries (f32 cast, square, pre-downcast result).
    bytes_per_row = hidden * (4 * itemsize + 3 * 4)
    budget = int(vmem_limit * 0.6)
    tile = max(align, (budget // max(1, bytes_per_row)) // align * align)
    tile = min(tile, _MAX_ROW_TILE)
    if rows <= tile:
        # One block covers everything (block == full dim is always legal) ...
        tile = rows
        # ... but prefer >=2 grid steps so the v7x megacore can shard the
        # parallel row axis across its 2 TensorCores.
        if rows > 2 * align:
            tile = max(align, (pl.cdiv(rows, 2) // align) * align)
    return tile


def scale_norm(x, scale, eps=1e-6, row_tile=None):
    """ScaleNorm over the last axis of x.

    x:     [..., hidden]
    scale: scalar float32 parameter (sqrt(hidden) at init)
    """
    orig_shape = x.shape
    hidden = orig_shape[-1]
    rows = math.prod(orig_shape[:-1]) if len(orig_shape) > 1 else 1
    x2d = x.reshape(rows, hidden)

    vmem_limit = _vmem_limit_bytes()
    if row_tile is None:
        row_tile = _pick_row_tile(rows, hidden, jnp.dtype(x.dtype).itemsize,
                                  vmem_limit)
    row_tile = min(row_tile, rows)
    grid = pl.cdiv(rows, row_tile)   # partial last block handled by Pallas

    scale_arr = jnp.asarray(scale, dtype=jnp.float32).reshape(1)

    out = pl.pallas_call(
        _scale_norm_kernel(float(eps)),
        out_shape=jax.ShapeDtypeStruct((rows, hidden), x.dtype),
        grid=(grid,),
        in_specs=[
            pl.BlockSpec(memory_space=pltpu.MemorySpace.SMEM),    # scale scalar
            pl.BlockSpec((row_tile, hidden), lambda i: (i, 0)),   # x row tile
        ],
        out_specs=pl.BlockSpec((row_tile, hidden), lambda i: (i, 0)),
        compiler_params=pltpu.CompilerParams(
            dimension_semantics=("parallel",),
            vmem_limit_bytes=vmem_limit,
        ),
    )(scale_arr, x2d)

    return out.reshape(orig_shape)


def scale_norm_ref(x, scale, eps=1e-6):
    xf = x.astype(jnp.float32)
    norm = jnp.sqrt(jnp.mean(xf * xf, axis=-1, keepdims=True))
    return (scale * xf / (norm + eps)).astype(x.dtype)


if __name__ == "__main__":
    key = jax.random.PRNGKey(0)
    eps = 1e-6

    # Small shape consistent with the module's [*, hidden] contract.
    batch, seq, hidden = 2, 8, 32
    x = jax.random.normal(key, (batch, seq, hidden), dtype=jnp.float32)
    scale = jnp.float32(hidden ** 0.5)  # nn.Parameter(torch.tensor(hidden**0.5))

    y = jax.block_until_ready(scale_norm(x, scale, eps=eps))
    y_ref = scale_norm_ref(x, scale, eps=eps)
    assert y.shape == x.shape and y.dtype == x.dtype
    assert jnp.allclose(y, y_ref, atol=1e-5, rtol=1e-5), "mismatch vs reference"

    # Second shape: lane-dense hidden (multiple of 128) and a partial last
    # row block (no host-side padding round-trip).
    x2 = jax.random.normal(jax.random.PRNGKey(0), (3, 37, 256), dtype=jnp.float32)
    s2 = jnp.float32(256 ** 0.5)
    y2 = jax.block_until_ready(scale_norm(x2, s2, eps=eps))
    y2_ref = scale_norm_ref(x2, s2, eps=eps)
    assert y2.shape == x2.shape and y2.dtype == x2.dtype
    assert jnp.allclose(y2, y2_ref, atol=1e-5, rtol=1e-5), "mismatch vs reference (partial block)"

    print("KERNEL_OK")
</pallas_src>

<mosaic_0001>
module attributes {stable_mosaic.version = 11 : i64} {
  func.func @kernel(%arg0: i32, %arg1: memref<1xf32, #tpu.memory_space<smem>>, %arg2: memref<16x32xf32, #tpu.memory_space<vmem>>, %arg3: memref<16x32xf32, #tpu.memory_space<vmem>>) attributes {dimension_semantics = [#tpu.dimension_semantics<parallel>], iteration_bounds = array<i64: 1>, scalar_prefetch = 0 : i64, scratch_operands = 0 : i64, tpu.core_type = #tpu.core_type<tc>, window_params = [{transform_indices = @transform_0, window_bounds = array<i64: 1>}, {transform_indices = @transform_1, window_bounds = array<i64: 16, 32>}, {transform_indices = @transform_2, window_bounds = array<i64: 16, 32>}]} {
    %c0 = arith.constant 0 : index
    %c0_0 = arith.constant 0 : index
    %0 = vector.load %arg2[%c0, %c0_0] : memref<16x32xf32, #tpu.memory_space<vmem>>, vector<16x32xf32>
    %1 = arith.mulf %0, %0 : vector<16x32xf32>
    %cst = arith.constant dense<0.000000e+00> : vector<16xf32>
    %2 = vector.multi_reduction <add>, %1, %cst [1] : vector<16x32xf32> to vector<16xf32>
    %3 = vector.shape_cast %2 : vector<16xf32> to vector<16x1xf32>
    %cst_1 = arith.constant 3.200000e+01 : f32
    %4 = vector.broadcast %cst_1 : f32 to vector<16x1xf32>
    %5 = arith.divf %3, %4 : vector<16x1xf32>
    %6 = math.sqrt %5 : vector<16x1xf32>
    %cst_2 = arith.constant 9.99999997E-7 : f32
    %7 = vector.broadcast %cst_2 : f32 to vector<16x1xf32>
    %8 = arith.addf %6, %7 : vector<16x1xf32>
    %9 = tpu.reciprocal %8 : vector<16x1xf32> -> vector<16x1xf32>
    %c0_3 = arith.constant 0 : index
    %10 = memref.load %arg1[%c0_3] : memref<1xf32, #tpu.memory_space<smem>>
    %11 = vector.broadcast %10 : f32 to vector<16x1xf32>
    %12 = arith.mulf %9, %11 : vector<16x1xf32>
    %13 = vector.broadcast %12 : vector<16x1xf32> to vector<16x32xf32>
    %14 = arith.mulf %0, %13 : vector<16x32xf32>
    %c0_4 = arith.constant 0 : index
    %c0_5 = arith.constant 0 : index
    %15 = vector.load %arg3[%c0_4, %c0_5] : memref<16x32xf32, #tpu.memory_space<vmem>>, vector<16x32xf32>
    tpu.vector_store %arg3[%c0_4, %c0_5], %14 {strides = array<i32>} : memref<16x32xf32, #tpu.memory_space<vmem>>, vector<16x32xf32>,
    return
  }
  func.func @transform_0(%arg0: i32) -> i32 {
    %c0_i32 = arith.constant 0 : i32
    %c0_i32_0 = arith.constant 0 : i32
    return %c0_i32 : i32
  }
  func.func @transform_1(%arg0: i32) -> (i32, i32) {
    %c0_i32 = arith.constant 0 : i32
    %c0_i32_0 = arith.constant 0 : i32
    return %arg0, %c0_i32 : i32, i32
  }
  func.func @transform_2(%arg0: i32) -> (i32, i32) {
    %c0_i32 = arith.constant 0 : i32
    %c0_i32_0 = arith.constant 0 : i32
    return %arg0, %c0_i32 : i32, i32
  }
}

</mosaic_0001>

<bundles_post_ra>
// kernel: tpu_custom_call.1
= control target key start
LH: loop header
LB: loop body
LE: loop exit
PB: predicated region body
PF: predicated region fallthrough
CT: control target
= control target key end

     0   :  { %8 = vsyncpa [#allocation4], 0  ;;  %s246_s0 = inlined_call_operand.<no memory space> [shape: f32[1], index: 0, kind: input, shape index: {}]   ;;  %s247_s1 = inlined_call_operand.hbm [shape: f32[16,32], index: 1, kind: input, shape index: {}]   ;;  %s248_s2 = inlined_call_operand.hbm [shape: f32[16,32], index: 2, kind: output, shape index: {}]  }
   0x1   :  { %9 = vsyncpa [#allocation5], 0  ;;  %s16_s11 = sshll.u32 %s247_s1, 4  ;;  %s197_s12 = smov [#allocation3]   ;;  %s17_s11 = int_to_ptr.hbm [resolvable:$true] %s16_s11 }
   0x2   :  { %s18_s13 = sshll.u32 %s197_s12, 4  ;;  %s198_s14 = smov 128   ;;  %s19_s13 = int_to_ptr.vmem [resolvable:$true] %s18_s13 }
   0x3   :  { %s199_s15 = smov 8  }
   0x4   :  { %24 = dma.hbm_to_vmem [thread:$0]  %s17_s11, 256, %s19_s13, [#allocation4], %s198_s14, %s198_s14, %s199_s15  }
   0x5   :  { %193 = dma.done.wait [#allocation4], 256  }
   0x6   :  { %194 = vsyncadd [#allocation4], 4294967040  ;;  %v223_v0 = vld [vmem:[#allocation3] sm:$0xff]  ;;  %vm33_vm0 = vcmask 261120   ;;  %v227_v2 = vld [vmem:[#allocation3 + $0x8] sm:$0xff]  ;;  %v200_v6 = vmov 32.0   ;;  %v104_v48 = vstv %s246_s0 }
   0x7   :  { %v31_v1 = vmul.f32 %v223_v0, %v223_v0  ;;  %v32_v4 = vmul.f32 %v227_v2, %v227_v2  ;;  %135 = vrcp.f32 %v200_v6  ;;  %s201_s0 = smov [#allocation6]   ;;  %s117_s20 = sshll.u32 %s248_s2, 4  ;;  %s118_s20 = int_to_ptr.hbm [resolvable:$true] %s117_s20 }
   0x8   :  { %s115_s17 = sshll.u32 %s201_s0, 4  ;;  %s116_s17 = int_to_ptr.vmem [resolvable:$true] %s115_s17 }
   0x9   :  { %v34_v3 = vsel %vm33_vm0, %v31_v1, 0.0  ;;  %v37_v5 = vsel %vm33_vm0, %v32_v4, 0.0 }
   0xa   :  { %35 = vadd.xlane.f32.xlu0 %v34_v3 }
   0xd   :  { %v136_v7 = vpop.eup %135 }
   0xe   :  { %v41_v8 = vmul.f32 32.0, %v136_v7  ;;  %vm45_vm1 = vweird.f32 %v136_v7 }
  0x10   :  { %v42_v9 = vsub.f32 1.0, %v41_v8 }
  0x12   :  { %38 = vadd.xlane.f32.xlu0 %v37_v5  ;;  %v43_v10 = vmul.f32 %v136_v7, %v42_v9 }
  0x14   :  { %v44_v11 = vadd.f32 %v136_v7, %v43_v10 }
  0x16   :  { %v46_v12 = vsel %vm45_vm1, %v136_v7, %v44_v11 }
  0x7d   :  { %v36_v13 = vpop.xlane.xlu0 %35 }
  0x7e   :  { %v47_v14 = vmul.f32 %v46_v12, %v36_v13 }
  0x80   :  { %137 = vrsqrt.f32 %v47_v14  ;;  %vm56_vm2 = vcmp.eq.f32.partialorder %v47_v14, inf  ;;  %v59_v27 = vand.u32 2147483648, %v47_v14  ;;  %vm58_vm3 = vcmp.eq.f32.partialorder %v47_v14, 0.0 }
  0x85   :  { %v39_v15 = vpop.xlane.xlu0 %38 }
  0x86   :  { %v138_v16 = vpop.eup %137  ;;  %v48_v17 = vmul.f32 %v46_v12, %v39_v15 }
  0x87   :  { %v50_v18 = vmul.f32 %v138_v16, %v47_v14 }
  0x88   :  { %139 = vrsqrt.f32 %v48_v17  ;;  %vm68_vm4 = vcmp.eq.f32.partialorder %v48_v17, inf  ;;  %v71_v35 = vand.u32 2147483648, %v48_v17  ;;  %vm70_vm5 = vcmp.eq.f32.partialorder %v48_v17, 0.0 }
  0x89   :  { %v51_v19 = vmul.f32 %v138_v16, %v50_v18 }
  0x8b   :  { %v52_v20 = vmul.f32 0.5, %v51_v19 }
  0x8d   :  { %v53_v21 = vsub.f32 1.5, %v52_v20 }
  0x8e   :  { %v140_v22 = vpop.eup %139 }
  0x8f   :  { %v54_v23 = vmul.f32 %v138_v16, %v53_v21  ;;  %v62_v24 = vmul.f32 %v140_v22, %v48_v17 }
  0x91   :  { %v55_v25 = vmul.f32 %v54_v23, %v47_v14  ;;  %v63_v26 = vmul.f32 %v140_v22, %v62_v24 }
  0x93   :  { %v57_v28 = vsel %vm56_vm2, %v47_v14, %v55_v25  ;;  %v64_v29 = vmul.f32 0.5, %v63_v26 }
  0x94   :  { %v60_v30 = vsel %vm58_vm3, %v59_v27, %v57_v28 }
  0x95   :  { %v73_v31 = vadd.f32 1e-06, %v60_v30  ;;  %v65_v32 = vsub.f32 1.5, %v64_v29 }
  0x97   :  { %141 = vrcp.f32 %v73_v31  ;;  %v66_v33 = vmul.f32 %v140_v22, %v65_v32  ;;  %v86_v42 = vand.u32 2147483648, %v73_v31  ;;  %v84_v44 = vand.u32 2147483647, %v73_v31 }
  0x98   :  { %vm80_vm7 = vweird.f32 %v73_v31 }
  0x99   :  { %v67_v34 = vmul.f32 %v66_v33, %v48_v17  ;;  %v87_v47 = vor.u32 1.1754944e-38, %v86_v42  ;;  %vm85_vm9 = vcmp.eq.f32.partialorder %v84_v44, 8.507059e+37 }
  0x9b   :  { %v69_v36 = vsel %vm68_vm4, %v48_v17, %v67_v34 }
  0x9c   :  { %v72_v37 = vsel %vm70_vm5, %v71_v35, %v69_v36 }
  0x9d   :  { %v142_v38 = vpop.eup %141  ;;  %v74_v39 = vadd.f32 1e-06, %v72_v37 }
  0x9e   :  { %v76_v40 = vmul.f32 %v142_v38, %v73_v31  ;;  %vm81_vm6 = vweird.f32 %v142_v38 }
  0x9f   :  { %143 = vrcp.f32 %v74_v39  ;;  %vm82_vm8 = vmor %vm80_vm7, %vm81_vm6  ;;  %v100_v54 = vand.u32 2147483648, %v74_v39  ;;  %v98_v56 = vand.u32 2147483647, %v74_v39  ;;  %vm94_vm11 = vweird.f32 %v74_v39 }
  0xa0   :  { %v77_v41 = vsub.f32 1.0, %v76_v40 }
  0xa1   :  { %v101_v59 = vor.u32 1.1754944e-38, %v100_v54  ;;  %vm99_vm13 = vcmp.eq.f32.partialorder %v98_v56, 8.507059e+37 }
  0xa2   :  { %v78_v43 = vmul.f32 %v142_v38, %v77_v41 }
  0xa4   :  { %v79_v45 = vadd.f32 %v142_v38, %v78_v43 }
  0xa5   :  { %v144_v46 = vpop.eup %143 }
  0xa6   :  { %v83_v49 = vsel %vm82_vm8, %v142_v38, %v79_v45  ;;  %v90_v50 = vmul.f32 %v144_v46, %v74_v39  ;;  %vm95_vm10 = vweird.f32 %v144_v46 }
  0xa7   :  { %v88_v51 = vsel %vm85_vm9, %v87_v47, %v83_v49  ;;  %vm96_vm12 = vmor %vm94_vm11, %vm95_vm10 }
  0xa8   :  { %v91_v52 = vsub.f32 1.0, %v90_v50  ;;  %v105_v53 = vmul.f32 %v104_v48, %v88_v51 }
  0xaa   :  { %v92_v55 = vmul.f32 %v144_v46, %v91_v52  ;;  %v107_v57 = vmul.f32 %v105_v53, %v223_v0 }
  0xac   :  { %v93_v58 = vadd.f32 %v144_v46, %v92_v55  ;;  %109 = vst.msk [vmem:[#allocation6] sm:$0xff] %vm33_vm0, %v107_v57 }
  0xae   :  { %v97_v60 = vsel %vm96_vm12, %v144_v46, %v93_v58 }
  0xaf   :  { %v102_v61 = vsel %vm99_vm13, %v101_v59, %v97_v60 }
  0xb0   :  { %v106_v62 = vmul.f32 %v104_v48, %v102_v61 }
  0xb2   :  { %v108_v63 = vmul.f32 %v106_v62, %v227_v2 }
  0xb4   :  { %110 = vst.msk [vmem:[#allocation6 + $0x8] sm:$0xff] %vm33_vm0, %v108_v63 }
  0xb5   :  { %123 = dma.vmem_to_hbm [thread:$0]  %s116_s17, 256, %s118_s20, [#allocation5], %s198_s14, %s198_s14, %s199_s15  }
  0xb6   :  { %195 = dma.done.wait [#allocation5], 256  }
  0xb7   :  { %196 = vsyncadd [#allocation5], 4294967040 }
  0xb8   :  { %128 = vsyncpa [#allocation4], 1 }
  0xb9   :  { %129 = vsyncpa [#allocation5], 1 }

</bundles_post_ra>
